<compile_context>
chip_gen: v7x
topology: tpu7x:2x2x1
jax: 0.10.0
libtpu: 0.0.40
codegen_flags: <defaults>
</compile_context>

<pallas_src>
import functools
import math

import jax
import jax.numpy as jnp
from jax.experimental import pallas as pl
from jax.experimental.pallas import tpu as pltpu

LANE = 128


def _round_up(x, m):
    return (x + m - 1) // m * m


def _device_defaults():
    """(block_rows, vmem_limit_bytes) tuned per TPU generation."""
    try:
        kind = jax.devices()[0].device_kind.lower()
    except Exception:  # pragma: no cover - defensive
        kind = ""
    if "v6" in kind:                       # v6e: 128 MiB VMEM, 256-tall MXU
        return 1024, 96 * 1024 * 1024
    if "v5" in kind:                       # v5e: 128 MiB VMEM, 128-tall MXU
        return 512, 64 * 1024 * 1024
    # v7x (64 MiB VMEM per TC) or unknown: conservative budget.
    return 512, 40 * 1024 * 1024


def _self_attention_kernel(x_ref, w_ref, b_ref, o_ref, *, seq_len, d_k, v_off):
    rows = x_ref.shape[0]                  # bt * S rows in this tile
    bt = rows // seq_len
    v_pad = o_ref.shape[1]

    # Fused [Q|K | Vpad] projection: one bf16 MXU matmul, f32 accumulate + bias.
    x = x_ref[...]                                              # (rows, E) bf16
    qkv = jnp.dot(x, w_ref[...], preferred_element_type=jnp.float32)
    qkv = qkv + b_ref[...]                                      # (rows, C) f32

    # Q already carries the 1/sqrt(d_k) scale (folded into the weights).
    q = qkv[:, 0:d_k]                                           # narrow slice
    k = qkv[:, d_k:2 * d_k]                                     # narrow slice
    v = qkv[:, v_off:v_off + v_pad]                             # lane-aligned

    q = q.astype(jnp.bfloat16).reshape(bt, seq_len, d_k)
    k = k.astype(jnp.bfloat16).reshape(bt, seq_len, d_k)
    v = v.astype(jnp.bfloat16).reshape(bt, seq_len, v_pad)

    # Scores: contract the last (d_k) dims directly — no explicit k.T.
    scores = jnp.einsum("bqd,bkd->bqk", q, k,
                        preferred_element_type=jnp.float32)     # (bt, S, S) f32

    # Numerically stable softmax in f32; approx reciprocal runs on the EUP.
    m = jnp.max(scores, axis=-1, keepdims=True)
    p = jnp.exp(scores - m)
    denom = jnp.sum(p, axis=-1, keepdims=True)
    attn = p * pl.reciprocal(denom, approx=True)

    # PV matmul over the 128-lane-padded V => lane-dense output slab.
    out = jnp.einsum("bqk,bkd->bqd", attn.astype(jnp.bfloat16), v,
                     preferred_element_type=jnp.float32)        # (bt, S, v_pad)

    o_ref[...] = out.reshape(rows, v_pad).astype(o_ref.dtype)   # bf16 store


def self_attention_pallas(x, wq, bq, wk, bk, wv, bv, *,
                          block_rows=None, vmem_limit_bytes=None):
    """x: (B, S, E); wq/wk/wv: (E, d_k) (transposed vs nn.Linear storage);
    bq/bk/bv: (1, d_k).  Returns (B, S, d_k) float32."""
    B, S, E = x.shape
    d_k = wq.shape[1]
    scale = 1.0 / (d_k ** 0.5)

    def_rows, def_vmem = _device_defaults()
    block_rows = def_rows if block_rows is None else block_rows
    vmem_limit_bytes = def_vmem if vmem_limit_bytes is None else vmem_limit_bytes

    # --- Fused, lane-friendly parameter layout ------------------------------
    qk_pad = _round_up(2 * d_k, LANE)      # Q|K packed tightly, padded once
    v_pad = _round_up(d_k, LANE)           # V padded so PV output is lane-dense

    wqk = jnp.concatenate([wq * scale, wk], axis=1)             # fold scale
    wqk = jnp.pad(wqk, ((0, 0), (0, qk_pad - 2 * d_k)))
    wvp = jnp.pad(wv, ((0, 0), (0, v_pad - d_k)))
    w_fused = jnp.concatenate([wqk, wvp], axis=1).astype(jnp.bfloat16)

    bqk = jnp.concatenate([bq * scale, bk], axis=1)
    bqk = jnp.pad(bqk, ((0, 0), (0, qk_pad - 2 * d_k)))
    bvp = jnp.pad(bv, ((0, 0), (0, v_pad - d_k)))
    b_fused = jnp.concatenate([bqk, bvp], axis=1).astype(jnp.float32)

    # --- Row-tile selection --------------------------------------------------
    # Keep rows_per_tile = bt*S a multiple of 8 (block-shape rule) and MXU
    # sized; pad the batch instead of shrinking bt to 1.
    bt_mult = 8 // math.gcd(S, 8)
    bt = max(bt_mult, (max(1, block_rows // S) // bt_mult) * bt_mult)
    # Give dual-TC chips (v7x) at least 2 parallel grid steps when B allows.
    if B >= 2 * bt_mult:
        bt = min(bt, _round_up((B + 1) // 2, bt_mult))
    B_pad = _round_up(B, bt)
    rows_per_tile = bt * S
    grid = (B_pad // bt,)

    x_bf16 = x.astype(jnp.bfloat16)
    if B_pad != B:
        # Padded batch elements are independent rows; their (finite) outputs
        # are sliced off below.
        x_bf16 = jnp.pad(x_bf16, ((0, B_pad - B), (0, 0), (0, 0)))
    x2d = x_bf16.reshape(B_pad * S, E)

    fused_cols = qk_pad + v_pad

    out_padded = pl.pallas_call(
        functools.partial(_self_attention_kernel,
                          seq_len=S, d_k=d_k, v_off=qk_pad),
        out_shape=jax.ShapeDtypeStruct((B_pad * S, v_pad), jnp.bfloat16),
        grid=grid,
        in_specs=[
            pl.BlockSpec((rows_per_tile, E), lambda i: (i, 0)),    # x rows
            pl.BlockSpec((E, fused_cols), lambda i: (0, 0)),       # fused W
            pl.BlockSpec((1, fused_cols), lambda i: (0, 0)),       # fused b
        ],
        out_specs=pl.BlockSpec((rows_per_tile, v_pad), lambda i: (i, 0)),
        compiler_params=pltpu.CompilerParams(
            dimension_semantics=("parallel",),
            vmem_limit_bytes=vmem_limit_bytes),
    )(x2d, w_fused, b_fused)

    # Drop batch padding and the zero V-pad columns; return f32 like the ref.
    out = out_padded.reshape(B_pad, S, v_pad)[:B, :, :d_k]
    return out.astype(jnp.float32)


def self_attention_ref(x, wq, bq, wk, bk, wv, bv):
    d_k = wq.shape[1]
    q = x @ wq + bq
    k = x @ wk + bk
    v = x @ wv + bv
    scores = jnp.einsum("bqd,bkd->bqk", q, k) / (d_k ** 0.5)
    attn = jax.nn.softmax(scores, axis=-1)
    return jnp.einsum("bqk,bkd->bqd", attn, v)


if __name__ == "__main__":
    # Small shapes consistent with the module: batch=2, seq=8, embedding=32, d_k=16
    B, S, E, D = 2, 8, 32, 16

    key = jax.random.PRNGKey(0)
    kx, kq, kbq, kk, kbk, kv, kbv = jax.random.split(key, 7)

    x = jax.random.normal(kx, (B, S, E), dtype=jnp.float32)

    # Deterministic parameter init (mimics nn.Linear's uniform(-1/sqrt(E), 1/sqrt(E))).
    bound = 1.0 / (E ** 0.5)

    def uinit(k, shape):
        return jax.random.uniform(k, shape, jnp.float32, minval=-bound, maxval=bound)

    # PyTorch nn.Linear stores weight as (d_k, E); we pass the transpose (E, d_k).
    wq = uinit(kq, (D, E)).T
    wk = uinit(kk, (D, E)).T
    wv = uinit(kv, (D, E)).T
    bq = uinit(kbq, (1, D))
    bk = uinit(kbk, (1, D))
    bv = uinit(kbv, (1, D))

    out = self_attention_pallas(x, wq, bq, wk, bk, wv, bv)
    out = jax.block_until_ready(out)

    ref = self_attention_ref(x, wq, bq, wk, bk, wv, bv)
    assert out.shape == (B, S, D)
    # bf16 MXU inputs + bf16 output + approx reciprocal => bf16-level tolerance.
    assert jnp.allclose(out, ref, atol=2e-2, rtol=2e-2), "mismatch vs JAX reference"

    print("KERNEL_OK")
</pallas_src>

<mosaic_0001>
module attributes {stable_mosaic.version = 11 : i64} {
  func.func @_self_attention_kernel(%arg0: i32, %arg1: memref<8x32xbf16, #tpu.memory_space<vmem>>, %arg2: memref<32x256xbf16, #tpu.memory_space<vmem>>, %arg3: memref<1x256xf32, #tpu.memory_space<vmem>>, %arg4: memref<8x128xbf16, #tpu.memory_space<vmem>>) attributes {dimension_semantics = [#tpu.dimension_semantics<parallel>], iteration_bounds = array<i64: 2>, scalar_prefetch = 0 : i64, scratch_operands = 0 : i64, tpu.core_type = #tpu.core_type<tc>, window_params = [{transform_indices = @transform_0, window_bounds = array<i64: 8, 32>}, {pipeline_mode = #tpu.pipeline_mode<synchronous>, transform_indices = @transform_1, window_bounds = array<i64: 32, 256>}, {pipeline_mode = #tpu.pipeline_mode<synchronous>, transform_indices = @transform_2, window_bounds = array<i64: 1, 256>}, {transform_indices = @transform_3, window_bounds = array<i64: 8, 128>}]} {
    %c0 = arith.constant 0 : index
    %c0_0 = arith.constant 0 : index
    %0 = vector.load %arg1[%c0, %c0_0] : memref<8x32xbf16, #tpu.memory_space<vmem>>, vector<8x32xbf16>
    %c0_1 = arith.constant 0 : index
    %c0_2 = arith.constant 0 : index
    %1 = vector.load %arg2[%c0_1, %c0_2] : memref<32x256xbf16, #tpu.memory_space<vmem>>, vector<32x256xbf16>
    %cst = arith.constant dense<0.000000e+00> : vector<8x256xf32>
    %2 = tpu.matmul %0, %1, %cst {dimension_numbers = #tpu.dot_dimension_numbers<[1], [0], [0], [1], [0, 0, 1, 1], [], []>} : vector<8x32xbf16>, vector<32x256xbf16>, vector<8x256xf32> -> vector<8x256xf32>
    %c0_3 = arith.constant 0 : index
    %c0_4 = arith.constant 0 : index
    %3 = vector.load %arg3[%c0_3, %c0_4] : memref<1x256xf32, #tpu.memory_space<vmem>>, vector<1x256xf32>
    %4 = vector.broadcast %3 : vector<1x256xf32> to vector<8x256xf32>
    %5 = arith.addf %2, %4 : vector<8x256xf32>
    %6 = vector.extract_strided_slice %5 {offsets = [0, 0], sizes = [8, 16], strides = [1, 1]} : vector<8x256xf32> to vector<8x16xf32>
    %7 = vector.extract_strided_slice %5 {offsets = [0, 16], sizes = [8, 16], strides = [1, 1]} : vector<8x256xf32> to vector<8x16xf32>
    %8 = vector.extract_strided_slice %5 {offsets = [0, 128], sizes = [8, 128], strides = [1, 1]} : vector<8x256xf32> to vector<8x128xf32>
    %9 = arith.truncf %6 : vector<8x16xf32> to vector<8x16xbf16>
    %10 = vector.shape_cast %9 : vector<8x16xbf16> to vector<1x8x16xbf16>
    %11 = arith.truncf %7 : vector<8x16xf32> to vector<8x16xbf16>
    %12 = vector.shape_cast %11 : vector<8x16xbf16> to vector<1x8x16xbf16>
    %13 = arith.truncf %8 : vector<8x128xf32> to vector<8x128xbf16>
    %14 = vector.shape_cast %13 : vector<8x128xbf16> to vector<1x8x128xbf16>
    "tpu.trace_start"() <{level = 10 : i32, message = "bqd,bkd->bqk"}> : () -> ()
    %cst_5 = arith.constant dense<0.000000e+00> : vector<1x8x8xf32>
    %15 = tpu.matmul %10, %12, %cst_5 {dimension_numbers = #tpu.dot_dimension_numbers<[2], [2], [1], [1], [0, 0, 0, 1, 1, 1], [0], [0]>} : vector<1x8x16xbf16>, vector<1x8x16xbf16>, vector<1x8x8xf32> -> vector<1x8x8xf32>
    "tpu.trace_stop"() : () -> ()
    %cst_6 = arith.constant dense<0xFF800000> : vector<1x8xf32>
    %16 = vector.multi_reduction <maximumf>, %15, %cst_6 [2] : vector<1x8x8xf32> to vector<1x8xf32>
    %17 = vector.shape_cast %16 : vector<1x8xf32> to vector<1x8x1xf32>
    %18 = vector.broadcast %17 : vector<1x8x1xf32> to vector<1x8x8xf32>
    %19 = arith.subf %15, %18 : vector<1x8x8xf32>
    %20 = math.exp %19 : vector<1x8x8xf32>
    %cst_7 = arith.constant dense<0.000000e+00> : vector<1x8xf32>
    %21 = vector.multi_reduction <add>, %20, %cst_7 [2] : vector<1x8x8xf32> to vector<1x8xf32>
    %22 = vector.shape_cast %21 : vector<1x8xf32> to vector<1x8x1xf32>
    %23 = tpu.reciprocal %22 {approx = true} : vector<1x8x1xf32> -> vector<1x8x1xf32>
    %24 = vector.broadcast %23 : vector<1x8x1xf32> to vector<1x8x8xf32>
    %25 = arith.mulf %20, %24 : vector<1x8x8xf32>
    %26 = arith.truncf %25 : vector<1x8x8xf32> to vector<1x8x8xbf16>
    "tpu.trace_start"() <{level = 10 : i32, message = "bqk,bkd->bqd"}> : () -> ()
    %cst_8 = arith.constant dense<0.000000e+00> : vector<1x8x128xf32>
    %27 = tpu.matmul %26, %14, %cst_8 {dimension_numbers = #tpu.dot_dimension_numbers<[2], [1], [1], [2], [0, 0, 0, 1, 1, 2], [0], [0]>} : vector<1x8x8xbf16>, vector<1x8x128xbf16>, vector<1x8x128xf32> -> vector<1x8x128xf32>
    "tpu.trace_stop"() : () -> ()
    %28 = vector.shape_cast %27 : vector<1x8x128xf32> to vector<8x128xf32>
    %29 = arith.truncf %28 : vector<8x128xf32> to vector<8x128xbf16>
    %c0_9 = arith.constant 0 : index
    %c0_10 = arith.constant 0 : index
    %30 = vector.load %arg4[%c0_9, %c0_10] : memref<8x128xbf16, #tpu.memory_space<vmem>>, vector<8x128xbf16>
    tpu.vector_store %arg4[%c0_9, %c0_10], %29 {strides = array<i32>} : memref<8x128xbf16, #tpu.memory_space<vmem>>, vector<8x128xbf16>,
    return
  }
  func.func @transform_0(%arg0: i32) -> (i32, i32) {
    %c0_i32 = arith.constant 0 : i32
    %c0_i32_0 = arith.constant 0 : i32
    return %arg0, %c0_i32 : i32, i32
  }
  func.func @transform_1(%arg0: i32) -> (i32, i32) {
    %c0_i32 = arith.constant 0 : i32
    %c0_i32_0 = arith.constant 0 : i32
    %c0_i32_1 = arith.constant 0 : i32
    return %c0_i32, %c0_i32_0 : i32, i32
  }
  func.func @transform_2(%arg0: i32) -> (i32, i32) {
    %c0_i32 = arith.constant 0 : i32
    %c0_i32_0 = arith.constant 0 : i32
    %c0_i32_1 = arith.constant 0 : i32
    return %c0_i32, %c0_i32_0 : i32, i32
  }
  func.func @transform_3(%arg0: i32) -> (i32, i32) {
    %c0_i32 = arith.constant 0 : i32
    %c0_i32_0 = arith.constant 0 : i32
    return %arg0, %c0_i32 : i32, i32
  }
}

</mosaic_0001>

<bundles_post_ra>
// kernel: tpu_custom_call.1
= control target key start
LH: loop header
LB: loop body
LE: loop exit
PB: predicated region body
PF: predicated region fallthrough
CT: control target
= control target key end

     0   :  { %8 = vsyncpa [#allocation3], 0  ;;  %s967_s0 = inlined_call_operand.hbm [shape: bf16[16,32], index: 0, kind: input, shape index: {}]   ;;  %s968_s1 = inlined_call_operand.hbm [shape: bf16[32,256], index: 1, kind: input, shape index: {}]   ;;  %s969_s2 = inlined_call_operand.vmem [shape: f32[1,256], index: 2, kind: input, shape index: {}]   ;;  %s970_s3 = inlined_call_operand.hbm [shape: bf16[16,128], index: 3, kind: output, shape index: {}]  }
   0x1   :  { %10 = vsyncpa [#allocation3 + $0x1], 0 }
   0x2   :  { %11 = vsyncpa [#allocation6], 0 }
   0x3   :  { %12 = vsyncpa [#allocation4], 0 }
   0x4   :  { %14 = vsyncpa [#allocation4 + $0x1], 0  ;;  %s761_s12 = smov 0   ;;  %s763_s13 = smov 0  }
   0x5   :  { %s765_s14 = smov 0   ;;  %s767_s15 = smov 0  }
   0x6 LB: > { %s782_s16 = sadd.s32 4294967295, %s730_s15   ;;  %s492_s17 = sadd.s32 4294967294, %s730_s15   ;;  %s730_s15 = sphi %s767_s15, %s990_s15   ;;  %s726_s14 = sphi %s765_s14, %s989_s14   ;;  %s722_s13 = sphi %s763_s13, %s988_s13   ;;  %s718_s12 = sphi %s761_s12, %s987_s12  }
   0x7   : > { %p40_p0 = scmp.ne.s32.totalorder %s722_s13, %s718_s12  ;;  %p971_p1 = scmp.eq.s32.totalorder %s782_s16, 0 }
   0x8   : > { %p112_p3 = scmp.eq.s32.totalorder %s492_s17, 1  ;;  %p493_p5 = scmp.ge.s32.totalorder %s730_s15, 1 }
   0x9   : > { %p791_p4 = por %p971_p1, %p40_p0  ;;  %p119_p7 = scmp.lt.s32.totalorder %s730_s15, 3 }
   0xa   : > { %p796_p6 = por %p112_p3, %p40_p0  ;;  %s732_s21 = smov [#allocation5]  }
   0xb   : > { %s974_s18 = scalar_select %p791_p4, 1, 0 }
   0xc   : > { %s975_s19 = scalar_select %p796_p6, 1, 0 }
   0xd   : > { %p801_p8 = pnand %p493_p5, %p119_p7  ;;  %s131_s22 = sshll.u32 %s732_s21, 4  ;;  %s805_s22 = int_to_ptr.vmem [resolvable:$true] %s131_s22 }
   0xe   : > { %s817_s24 = sadd.s32 1, %s730_s15   ;;  %s27_s25 = sadd.s32 1, %s726_s14 }
   0xf   : > { %s976_s20 = scalar_select %p801_p8, 1, 0 }
  0x10   : > { %p537_p9 = pneg %p801_p8  ;;  %s24_s26 = ssub.s32 %s730_s15, %s817_s24 }
  0x11   : > { %s602_s29 = scalar_lea.hbm %s968_s1, 512 }
  0x12   : > { %p812_p11 = pnand %p537_p9, %p971_p1  ;;  %p603_p12 = scmp.ne.s32.totalorder %s968_s1, %s602_s29 }
  0x13   : > { %p609_p5 = scmp.lt.u32.totalorder %s602_s29, %s968_s1 }
  0x14   : > { %p604_p13 = pneg %p812_p11 }
  0x16   : > { %p605_p0 = pnand %p604_p13, %p603_p12 }
  0x18   : > { %p606_p3 = pneg %p605_p0 }
  0x1a   : > { %p611_p7 = pnand %p609_p5, %p606_p3 }
  0x1c   : > { %614 = shalt.err (!%p611_p7)
}
  0x1d   : > { %s615_s7 = scalar_lea.vmem %s805_s22, 512  ;;  %p623_p2 = scmp.lt.s32.totalorder %s805_s22, %s805_s22 }
  0x1e   : > { %p616_p9 = scmp.ne.s32.totalorder %s805_s22, %s615_s7  ;;  %p624_p6 = scmp.lt.s32.totalorder %s615_s7, %s615_s7 }
  0x20   : > { %p618_p10 = pnand %p616_p9, %p604_p13  ;;  %p625_p4 = por %p624_p6, %p623_p2 }
  0x22   : > { %p619_p1 = pneg %p618_p10 }
  0x24   : > { %p626_p8 = pnand %p625_p4, %p619_p1 }
  0x26   : > { %629 = shalt.err (!%p626_p8)
}
  0x27   : > { %s733_s8 = smov 128   ;;  %s734_s9 = smov 8  }
  0x28   : > { %540 = dma.hbm_to_vmem [thread:$0]  (!%p812_p11), %s968_s1, 512, %s805_s22, [#allocation6], %s733_s8, %s733_s8, %s734_s9  }
  0x29   : > { %p25_p2 = scmp.eq.s32.totalorder %s24_s26, 0  ;;  %p34_p1 = scmp.ne.s32.totalorder %s726_s14, %s722_s13 }
  0x2a   : > { %p35_p4 = scmp.eq.s32.totalorder %s730_s15, 0  ;;  %p550_p6 = scmp.lt.s32.totalorder %s730_s15, 2 }
  0x2b   : > { %s848_s17 = scalar_select %p25_p2, %s726_s14, %s27_s25  }
  0x2c   : > { %p36_p8 = por %p35_p4, %p34_p1  ;;  %p978_p10 = scmp.eq.s32.totalorder %s782_s16, 1 }
  0x2d   : > { %s148_s27 = sand.u32 1, %s726_s14   ;;  %s497_s28 = sshll.u32 %s730_s15, 6 }
  0x2e   : > { %p852_p12 = por %p978_p10, %p34_p1  ;;  %s496_s29 = sshll.u32 %s148_s27, 2 }
  0x2f   : > { %s861_s4 = scalar_lea.hbm %s967_s0, %s497_s28  ;;  %s152_s22 = scalar_lea.vmem [#allocation2], %s496_s29 }
  0x30   : > { %s159_s25 = sshll.u32 %s152_s22, 4  ;;  %p863_p11 = pnand %p550_p6, %p36_p8  ;;  %s867_s25 = int_to_ptr.vmem [resolvable:$true] %s159_s25 }
  0x31   : > { %s149_s5 = scalar_lea.sflag [#allocation3], %s148_s27  ;;  %s630_s6 = scalar_lea.hbm %s861_s4, 64 }
  0x32   : > { %p631_p13 = scmp.ne.s32.totalorder %s861_s4, %s630_s6  ;;  %p632_p0 = pneg %p863_p11 }
  0x33   : > { %s635_s9 = scalar_lea.hbm %s967_s0, 128  ;;  %p636_p7 = scmp.lt.u32.totalorder %s861_s4, %s967_s0 }
  0x34   : > { %p633_p3 = pnand %p632_p0, %p631_p13  ;;  %p637_p9 = scmp.lt.u32.totalorder %s635_s9, %s630_s6 }
  0x35   : > { %p639_p1 = scmp.lt.u32.totalorder %s630_s6, %s861_s4 }
  0x36   : > { %p634_p5 = pneg %p633_p3  ;;  %p638_p2 = por %p637_p9, %p636_p7 }
  0x38   : > { %p640_p4 = por %p639_p1, %p638_p2 }
  0x3a   : > { %p641_p6 = pnand %p640_p4, %p634_p5 }
  0x3c   : > { %644 = shalt.err (!%p641_p6)
}
  0x3d   : > { %s645_s27 = scalar_lea.vmem %s867_s25, 64  ;;  %s735_s28 = smov [#allocation2]  }
  0x3e   : > { %p646_p8 = scmp.ne.s32.totalorder %s867_s25, %s645_s27  ;;  %s650_s29 = sshll.u32 %s735_s28, 4  ;;  %s651_s29 = int_to_ptr.vmem [resolvable:$false] %s650_s29 }
  0x3f   : > { %s652_s23 = scalar_lea.vmem %s651_s29, 128  ;;  %p653_p3 = scmp.lt.s32.totalorder %s867_s25, %s651_s29 }
  0x40   : > { %p648_p10 = pnand %p646_p8, %p632_p0  ;;  %p654_p7 = scmp.lt.s32.totalorder %s652_s23, %s645_s27 }
  0x42   : > { %p649_p13 = pneg %p648_p10  ;;  %p655_p9 = por %p654_p7, %p653_p3 }
  0x44   : > { %p656_p2 = pnand %p655_p9, %p649_p13 }
  0x46   : > { %659 = shalt.err (!%p656_p2)
}
  0x47   : > { %544 = dma.hbm_to_vmem [thread:$0]  (!%p863_p11), %s861_s4, 64, %s867_s25, %s149_s5  }
  0x48   : > { %p981_p5 = scmp.ne.s32.totalorder %s976_s20, 0 }
  0x49   : > { %s897_s30 = sand.u32 (!%p981_p5), 1, %s722_s13   ;;  %p982_p0 = scmp.ne.s32.totalorder (!%p981_p5), %s974_s18, 0 }
  0x4a   : > { %168 = sbr.rel (%p981_p5) target bundleno = 1189 (0x4a5), region = 32  ;;  %s499_s22 = sshll.u32 (!%p981_p5), %s897_s30, 2 }
  0x4b   : > { %s171_s6 = scalar_lea.sflag (!%p981_p5), [#allocation3], %s897_s30  ;;  %s174_s7 = scalar_lea.vmem (!%p981_p5), [#allocation2], %s499_s22 }
  0x51   : > { %705 = dma.done.wait (%p982_p0), %s171_s6, 64  }
  0x52   : > { %707 = vsyncadd (%p982_p0), %s171_s6, 4294967232  ;;  %p983_p11 = scmp.eq.s32.totalorder %s782_s16, 0 }
  0x54   : > { %709 = dma.done.wait (%p983_p11), [#allocation6], 512   ;;  %p984_p1 = pmov %p983_p11 }
  0x55   : > { %v736_v0 = vmov 0   ;;  %v592_v1 = vld [vmem:[#allocation5 + $0x4] ss:$8 sps:$4 sm:$0xff]   ;;  %v594_v2 = vld [vmem:[#allocation5] ss:$8 sps:$4 sm:$0xff]   ;;  %vm239_vm0 = vcmask 261120   ;;  %v209_v7 = vlaneseq }
  0x56   : > { %711 = vsyncadd (%p984_p1), [#allocation6], 4294966784  ;;  %275 = vmatprep.mubr.bf16.mxu0 %v736_v0  ;;  %243 = vmatprep.subr.bf16.mxu0 %v592_v1  ;;  %v595_v3 = vld [vmem:[#allocation5 + $0x14] ss:$8 sps:$4 sm:$0xff]   ;;  %v597_v4 = vld [vmem:[#allocation5 + $0x10] ss:$8 sps:$4 sm:$0xff]  }
  0x57   : > { %244 = vmatpush1.bf16.msra.mxu0 %v594_v2  ;;  %v202_v5 = vld [vmem:[%s174_s7] sm:$0xf]  ;;  %v737_v6 = vmov 0.0   ;;  %v210_v8 = vshrl.u32 %v209_v7, 7  ;;  %vm738_vm1 = vmmov 0   ;;  %vm352_vm2 = vcmask 1043456  }
  0x58   : > { %245 = vmatprep.subr.bf16.mxu0 %v595_v3  ;;  %517 = vmatprep.subr.bf16.mxu1 %v737_v6  ;;  %v207_v10 = vld [vmem:[%s969_s2] sm:$0x3]  ;;  %s739_s4 = smov 112   ;;  %vm289_vm3 = vcmask 130048   ;;  %vm336_vm4 = vcmask 64512   ;;  %s510_s25 = sshll.u32 %s782_s16, 6 }
  0x59   : > { %v211_v9 = vsub.s32 0, %v210_v8  ;;  %v215_v11 = vsub.s32 1, %v210_v8  ;;  %519 = vmatprep.mubr.msk.bf16.mxu1 %vm738_vm1, %v737_v6  ;;  %s200_s26 = scalar_lea.vmem [#allocation7], %s499_s22  ;;  %s923_s10 = scalar_lea.hbm %s970_s3, %s510_s25 }
  0x5a   : > { %s412_s5 = sshll.u32 %s200_s26, 4  ;;  %s399_s16 = scalar_lea.sflag [#allocation4], %s897_s30  ;;  %s925_s5 = int_to_ptr.vmem [resolvable:$true] %s412_s5 }
  0x5b   : > { %246 = vmatpush1.bf16.msra.mxu0 %v597_v4  ;;  %v212_v12 = vrot.slane %v207_v10, %v211_v9  ;;  %v216_v13 = vrot.slane %v207_v10, %v215_v11  ;;  %s660_s11 = scalar_lea.vmem %s925_s5, 64  ;;  %s740_s27 = smov [#allocation7]  }
  0x5c   : > { %523 = vmatprep.subr.bf16.mxu0 %v737_v6  ;;  %p661_p4 = scmp.ne.s32.totalorder %s925_s5, %s660_s11  ;;  %s664_s28 = sshll.u32 %s740_s27, 4  ;;  %s665_s28 = int_to_ptr.vmem [resolvable:$false] %s664_s28 }
  0x5d   : > { %s666_s29 = scalar_lea.vmem %s665_s28, 128  ;;  %p667_p10 = scmp.lt.s32.totalorder %s925_s5, %s665_s28 }
  0x5e   : > { %506 = vmatmul.mubr.msk.bf16.vlgmr.msra.gmra.mrb[0].mxu0 %vm239_vm0, %v202_v5  ;;  %p662_p6 = pnand %p661_p4, %p852_p12  ;;  %p668_p13 = scmp.lt.s32.totalorder %s666_s29, %s660_s11 }
  0x5f   : > { %525 = vmatprep.mubr.msk.bf16.mxu0 %vm738_vm1, %v737_v6 }
  0x60   : > { %p663_p8 = pneg %p662_p6  ;;  %p669_p3 = por %p668_p13, %p667_p10 }
  0x62   : > { %p670_p7 = pnand %p669_p3, %p663_p8 }
 0x131   : > { %v277_v14 = vpop.f32.mrb[0].mxu0 }
 0x132   : > { %v278_v15 = vadd.f32 %v277_v14, %v212_v12  ;;  %v279_v16 = vpop.f32.mrb[1].mxu0 }
 0x133   : > { %v280_v17 = vadd.f32 %v279_v16, %v216_v13  ;;  %v281_v18 = vpop.f32.mrb[2].mxu0 }
 0x134   : > { %v284_v19 = vpack.c.bf16 %v278_v15, %v278_v15  ;;  %v282_v20 = vpop.f32.mrb[3].mxu0 }
 0x135   : > { %v285_v21 = vpack.c.bf16 %v280_v17, %v280_v17 }
 0x136   : > { %287 = vrot.lane.b32.xlu0 %v284_v19, %s739_s4 }
 0x137   : > { %v354_v22 = vsel %vm352_vm2, %v285_v21, 0 }
 0x138   : > { %524 = vmatpush3.bf16.msra.mxu0 %v354_v22 }
 0x1a8   : > { %v288_v23 = vpop.permute.xlu0 %287 }
 0x1a9   : > { %v294_v24 = vsel %vm289_vm3, %v288_v23, 0 }
 0x1aa   : > { %518 = vmatpush3.bf16.xpose.msra.mxu1 %v294_v24 }
 0x1b1   : > { %520 = vmatmul.mubr.msk.bf16.vlgmr.msra.gmra.mrb[0].mxu1 %vm289_vm3, %v284_v19 }
 0x284   : > { %v330_v25 = vpop.f32.mrb[0].mxu1 }
 0x285   : > { %v521_v26 = vpop.f32.mrb[1].mxu1  ;;  %v337_v27 = vsel %vm336_vm4, %v330_v25, -inf }
 0x286   : > { %338 = vmax.xlane.f32.xlu0 %v337_v27  ;;  %v333_v28 = vpop.f32.mrb[2].mxu1 }
 0x287   : > { %v522_v29 = vpop.f32.mrb[3].mxu1 }
 0x313   : > { %v339_v30 = vpop.xlane.xlu0 %338 }
 0x314   : > { %v340_v31 = vsub.f32 %v330_v25, %v339_v30 }
 0x316   : > { %v341_v32 = vmul.f32 1.442695, %v340_v31 }
 0x318   : > { %598 = vpow2.f32 %v341_v32 }
 0x322   : > { %v599_v33 = vpop.eup %598 }
 0x323   : > { %v343_v34 = vsel %vm336_vm4, %v599_v33, 0.0 }
 0x324   : > { %344 = vadd.xlane.f32.xlu1 %v343_v34 }
 0x3b1   : > { %v345_v35 = vpop.xlane.xlu1 %344 }
 0x3b2   : > { %600 = vrcp.f32 %v345_v35 }
 0x3bc   : > { %v601_v36 = vpop.eup %600 }
 0x3bd   : > { %v347_v37 = vmul.f32 %v601_v36, %v599_v33 }
 0x3bf   : > { %v348_v38 = vpack.c.bf16 %v347_v37, %v347_v37 }
 0x3c1   : > { %526 = vmatmul.mubr.msk.bf16.vlgmr.msra.gmra.mrb[4].mxu0 %vm336_vm4, %v348_v38 }
 0x494   : > { %v390_v39 = vpop.f32.mrb[4].mxu0 }
 0x495   : > { %v396_v40 = vpack.c.bf16 %v390_v39, %v390_v39  ;;  %v527_v41 = vpop.f32.mrb[5].mxu0 }
 0x496   : > { %v393_v42 = vpop.f32.mrb[6].mxu0 }
 0x497   : > { %397 = vst [vmem:[%s200_s26] sm:$0xf] %v396_v40  ;;  %v528_v43 = vpop.f32.mrb[7].mxu0 }
 0x498   : > { %673 = shalt.err (!%p670_p7)
}
 0x499   : > { %s674_s23 = scalar_lea.hbm %s923_s10, 64  ;;  %s678_s6 = scalar_lea.hbm %s970_s3, 128 }
 0x49a   : > { %p675_p9 = scmp.ne.s32.totalorder %s923_s10, %s674_s23  ;;  %p679_p0 = scmp.lt.u32.totalorder %s923_s10, %s970_s3 }
 0x49b   : > { %p680_p11 = scmp.lt.u32.totalorder %s678_s6, %s674_s23  ;;  %p682_p4 = scmp.lt.u32.totalorder %s674_s23, %s923_s10 }
 0x49c   : > { %p676_p2 = pnand %p675_p9, %p852_p12 }
 0x49d   : > { %p681_p1 = por %p680_p11, %p679_p0 }
 0x49e   : > { %p677_p5 = pneg %p676_p2 }
 0x49f   : > { %p683_p6 = por %p682_p4, %p681_p1 }
 0x4a1   : > { %p684_p8 = pnand %p683_p6, %p677_p5 }
 0x4a3   : > { %687 = shalt.err (!%p684_p8)
}
 0x4a4   : > { %535 = dma.vmem_to_hbm [thread:$0]  (%p852_p12), %s925_s5, 64, %s923_s10, %s399_s16  }
 0x4a5 PF: > { %s424_s20 = sand.u32 1, %s718_s12   ;;  %p985_p10 = scmp.ne.s32.totalorder %s975_s19, 0 }
 0x4a6   : > { %p986_p13 = scmp.ge.s32.totalorder %s730_s15, 2  ;;  %s425_s4 = scalar_lea.sflag [#allocation4], %s424_s20 }
 0x4a8   : > { %p546_p3 = pnand %p986_p13, %p985_p10 }
 0x4aa   : > { %713 = dma.done.wait (!%p546_p3), %s425_s4, 64  }
 0x4ab   : > { %715 = vsyncadd (!%p546_p3), %s425_s4, 4294967232  ;;  %p17_p7 = scmp.ge.s32.totalorder %s817_s24, 4   ;;  %s987_s12 = smov %s722_s13 }
 0x4ac   : > { %s988_s13 = smov %s726_s14  ;;  %s989_s14 = smov %s848_s17 }
 0x4ad   : > { %s990_s15 = smov %s817_s24  ;;  %19 = sbr.rel (!%p17_p7) target bundleno = 6 (0x6), region = 81 }
 0x4b4   :  { %430 = vsyncpa [#allocation3], 1 }
 0x4b5   :  { %432 = vsyncpa [#allocation3 + $0x1], 1 }
 0x4b6   :  { %433 = vsyncpa [#allocation6], 1 }
 0x4b7   :  { %434 = vsyncpa [#allocation4], 1 }
 0x4b8   :  { %436 = vsyncpa [#allocation4 + $0x1], 1 }

</bundles_post_ra>
